<compile_context>
chip_gen: v7x
topology: tpu7x:2x2x1
jax: 0.10.0
libtpu: 0.0.40
codegen_flags: <defaults>
</compile_context>

<pallas_src>
import functools

import jax
import jax.numpy as jnp
import numpy as np
from jax.experimental import pallas as pl
from jax.experimental.pallas import tpu as pltpu


def _lstm_head_kernel(n_layers, hidden_dim, vocab_size, tok_ref, gate_tbl_ref, *refs):
    """refs = [w_1, ..., w_{L-1}, aux, out].

    tok_ref      : [1, TB] int32   token ids (batch on the lane axis)
    gate_tbl_ref : [3H, V]         folded (W_ih0[live] @ emb.T + b0) gate table, matmul dtype
    w_l          : [3H, H]         live gate rows (i, g, o) of weight_ih_l{l}, matmul dtype
    aux          : [3H*(L-1)+H+1, 1] f32  packed [b_1; ...; b_{L-1}; w_head; b_head]
    out_ref      : [1, TB] f32     lane-dense output slab
    """
    out_ref = refs[-1]
    aux = refs[-2][...]                                       # [3H*(L-1)+H+1, 1] f32
    w_refs = refs[:-2]                                        # layers 1..L-1
    H = hidden_dim
    TB = tok_ref.shape[1]
    cdt = gate_tbl_ref.dtype                                  # matmul compute dtype

    # Fused embedding gather + layer-0 projection + layer-0 bias: one-hot(ids) selects
    # columns of the pre-folded gate table (exactly one nonzero per column -> exact select).
    ids = tok_ref[...]                                        # [1, TB] int32
    iota_v = jax.lax.broadcasted_iota(jnp.int32, (vocab_size, TB), 0)
    onehot = (iota_v == ids).astype(cdt)                      # [V, TB]
    gates = jnp.dot(gate_tbl_ref[...], onehot,
                    preferred_element_type=jnp.float32)       # [3H, TB] f32

    def gate_act(g):
        # h_prev == c_prev == 0: c = sigmoid(i)*tanh(g), h = sigmoid(o)*tanh(c).
        i_g = jax.nn.sigmoid(g[0 * H:1 * H, :])
        g_g = jnp.tanh(g[1 * H:2 * H, :])
        o_g = jax.nn.sigmoid(g[2 * H:3 * H, :])
        return o_g * jnp.tanh(i_g * g_g)                      # [H, TB] f32

    x = gate_act(gates)
    for l in range(1, n_layers):
        b = aux[(l - 1) * 3 * H:l * 3 * H, :]                 # [3H, 1] f32
        gates = jnp.dot(w_refs[l - 1][...], x.astype(cdt),
                        preferred_element_type=jnp.float32) + b
        x = gate_act(gates)

    base = (n_layers - 1) * 3 * H
    w_head = aux[base:base + H, :]                            # [H, 1] f32 (folded fc2@fc)
    b_head = aux[base + H:base + H + 1, :]                    # [1, 1] f32
    # Folded fc∘fc2 head: VPU multiply + single sublane (XLU) reduction; output lane-dense.
    out = jnp.sum(x * w_head, axis=0, keepdims=True) + b_head          # [1, TB]
    out_ref[...] = out.astype(out_ref.dtype)


def prepare_params(params, matmul_dtype=jnp.bfloat16):
    """One-time packing: all layout/casting/algebra plumbing lives here, NOT in forward."""
    hi = jax.lax.Precision.HIGHEST
    f32 = jnp.float32
    emb = params["embedding"].astype(f32)                     # [V, E]
    lstm = params["lstm"]
    L = len(lstm)
    H = lstm[0][1].shape[-1]

    def live_rows(a):
        # Keep i, g, o gate rows; forget gate multiplies c_prev == 0 (exactly dead).
        return jnp.concatenate([a[0:H], a[2 * H:4 * H]], axis=0)

    # Layer 0: fold embedding + input projection + bias into a [3H, V] gate table.
    wih0, _whh0, b_ih0, b_hh0 = lstm[0]
    w0 = live_rows(wih0).astype(f32)                          # [3H, E]
    b0 = live_rows(b_ih0 + b_hh0).astype(f32)                 # [3H]
    gate_table = (jnp.dot(w0, emb.T, precision=hi) + b0[:, None]).astype(matmul_dtype)

    w_rest, aux_cols = [], []
    for l in range(1, L):
        wih, _whh, b_ih, b_hh = lstm[l]
        w_rest.append(live_rows(wih).astype(matmul_dtype))    # [3H, H]
        aux_cols.append(live_rows(b_ih + b_hh).reshape(3 * H, 1).astype(f32))

    wfc, bfc = params["fc"]                                   # [2000, H], [2000]
    wfc2, bfc2 = params["fc2"]                                # [1, 2000], [1]
    # Fold fc∘fc2 (both linear) into a single [H] head: exact up to f32 reassociation.
    w_head = jnp.dot(wfc2, wfc, precision=hi).reshape(H, 1).astype(f32)
    b_head = (jnp.dot(wfc2, bfc, precision=hi) + bfc2).reshape(1, 1).astype(f32)
    aux = jnp.concatenate(aux_cols + [w_head, b_head], axis=0)  # [3H*(L-1)+H+1, 1]

    return {"gate_table": gate_table, "w_rest": tuple(w_rest), "aux": aux}


def lstm_model_forward(tokens, packed, *, tile_b=None):
    """tokens: int32 [N] (each token is its own length-1 sequence). Returns f32 [N, 1]."""
    gate_table = packed["gate_table"]
    w_rest = packed["w_rest"]
    aux = packed["aux"]
    V = gate_table.shape[1]
    H = gate_table.shape[0] // 3
    L = 1 + len(w_rest)
    N = tokens.shape[0]

    if tile_b is None:
        tile_b = N   # single grid step: kernel is overhead-bound, extra steps only cost
    assert N % tile_b == 0, "batch must be divisible by the batch tile"
    assert tile_b == N or tile_b % 128 == 0, \
        "batch tile must be a multiple of 128 (lane axis) or the full batch"

    tok2d = tokens.reshape(1, N).astype(jnp.int32)

    def full_spec(a):
        return pl.BlockSpec(a.shape, lambda i: (0, 0))

    kernel_inputs = [tok2d, gate_table, *w_rest, aux]
    in_specs = [pl.BlockSpec((1, tile_b), lambda i: (0, i)), full_spec(gate_table)]
    in_specs += [full_spec(w) for w in w_rest]
    in_specs += [full_spec(aux)]

    kernel = functools.partial(_lstm_head_kernel, L, H, V)
    out = pl.pallas_call(
        kernel,
        out_shape=jax.ShapeDtypeStruct((1, N), jnp.float32),
        grid=(N // tile_b,),
        in_specs=in_specs,
        out_specs=pl.BlockSpec((1, tile_b), lambda i: (0, i)),
        compiler_params=pltpu.CompilerParams(dimension_semantics=("arbitrary",)),
    )(*kernel_inputs)
    return out.reshape(N, 1)


def init_params(key, vocab_size, embedding_dim, hidden_dim, n_layers,
                fc_dim=2000, out_dim=1):
    ks = iter(jax.random.split(key, 4 * n_layers + 8))
    params = {}
    # nn.Embedding default: N(0, 1)
    params["embedding"] = jax.random.normal(
        next(ks), (vocab_size, embedding_dim), jnp.float32)
    # nn.LSTM default: U(-1/sqrt(H), 1/sqrt(H)), gate order i, f, g, o
    k = 1.0 / np.sqrt(hidden_dim)
    lstm = []
    for l in range(n_layers):
        in_dim = embedding_dim if l == 0 else hidden_dim
        wih = jax.random.uniform(next(ks), (4 * hidden_dim, in_dim), jnp.float32, -k, k)
        whh = jax.random.uniform(next(ks), (4 * hidden_dim, hidden_dim), jnp.float32, -k, k)
        b_ih = jax.random.uniform(next(ks), (4 * hidden_dim,), jnp.float32, -k, k)
        b_hh = jax.random.uniform(next(ks), (4 * hidden_dim,), jnp.float32, -k, k)
        lstm.append((wih, whh, b_ih, b_hh))
    params["lstm"] = lstm
    # nn.Linear default: U(-1/sqrt(fan_in), 1/sqrt(fan_in))
    kfc = 1.0 / np.sqrt(hidden_dim)
    params["fc"] = (
        jax.random.uniform(next(ks), (fc_dim, hidden_dim), jnp.float32, -kfc, kfc),
        jax.random.uniform(next(ks), (fc_dim,), jnp.float32, -kfc, kfc),
    )
    kfc2 = 1.0 / np.sqrt(fc_dim)
    params["fc2"] = (
        jax.random.uniform(next(ks), (out_dim, fc_dim), jnp.float32, -kfc2, kfc2),
        jax.random.uniform(next(ks), (out_dim,), jnp.float32, -kfc2, kfc2),
    )
    return params


def reference_forward(tokens, params):
    """Pure-JAX reference with the full PyTorch LSTM step math (eval mode)."""
    hi = jax.lax.Precision.HIGHEST
    h = jnp.take(params["embedding"], tokens, axis=0).astype(jnp.float32)
    H = params["lstm"][0][1].shape[-1]
    for (wih, whh, b_ih, b_hh) in params["lstm"]:
        h_prev = jnp.zeros((h.shape[0], H), jnp.float32)
        c_prev = jnp.zeros((h.shape[0], H), jnp.float32)
        gates = jnp.dot(h, wih.T, precision=hi) + jnp.dot(h_prev, whh.T, precision=hi) \
            + b_ih + b_hh
        i = jax.nn.sigmoid(gates[:, 0 * H:1 * H])
        f = jax.nn.sigmoid(gates[:, 1 * H:2 * H])
        g = jnp.tanh(gates[:, 2 * H:3 * H])
        o = jax.nn.sigmoid(gates[:, 3 * H:4 * H])
        c = f * c_prev + i * g
        h = o * jnp.tanh(c)
    wfc, bfc = params["fc"]
    wfc2, bfc2 = params["fc2"]
    h1 = jnp.dot(h, wfc.T, precision=hi) + bfc
    return jnp.dot(h1, wfc2.T, precision=hi) + bfc2


if __name__ == "__main__":
    # Small, forward-consistent shapes.
    vocab_size = 256
    embedding_dim = 32
    hidden_dim = 32
    n_layers = 2
    N = 256            # "batch" = number of tokens (each token -> its own seq of len 1)

    key = jax.random.PRNGKey(0)
    pkey, dkey = jax.random.split(key)
    params = init_params(pkey, vocab_size, embedding_dim, hidden_dim, n_layers)
    tokens = jax.random.randint(dkey, (N,), 0, vocab_size, dtype=jnp.int32)

    ref = np.asarray(reference_forward(tokens, params))

    # Exact-semantics check: f32 matmul mode matches the full-LSTM reference tightly.
    packed_f32 = prepare_params(params, matmul_dtype=jnp.float32)
    out_f32 = jax.block_until_ready(lstm_model_forward(tokens, packed_f32))
    assert out_f32.shape == (N, 1)
    np.testing.assert_allclose(np.asarray(out_f32), ref, rtol=1e-4, atol=1e-4)

    # Default fast path: bf16 MXU operands, f32 accumulate/elementwise; parameter prep
    # done ONCE here and reused across calls (hoisted out of the per-call path).
    packed = prepare_params(params)
    fwd = jax.jit(functools.partial(lstm_model_forward, packed=packed))
    out = jax.block_until_ready(fwd(tokens))
    assert out.shape == (N, 1)
    np.testing.assert_allclose(np.asarray(out), ref, rtol=5e-2, atol=5e-3)

    # Second call exercises the cached, prep-free per-call path.
    out2 = jax.block_until_ready(fwd(tokens))
    np.testing.assert_allclose(np.asarray(out2), np.asarray(out), rtol=0, atol=0)

    print("KERNEL_OK")
</pallas_src>

<mosaic_0001>
module attributes {stable_mosaic.version = 11 : i64} {
  func.func @_lstm_head_kernel(%arg0: i32, %arg1: memref<1x256xi32, #tpu.memory_space<vmem>>, %arg2: memref<96x256xf32, #tpu.memory_space<vmem>>, %arg3: memref<96x32xf32, #tpu.memory_space<vmem>>, %arg4: memref<129x1xf32, #tpu.memory_space<vmem>>, %arg5: memref<1x256xf32, #tpu.memory_space<vmem>>) attributes {dimension_semantics = [#tpu.dimension_semantics<arbitrary>], iteration_bounds = array<i64: 1>, scalar_prefetch = 0 : i64, scratch_operands = 0 : i64, tpu.core_type = #tpu.core_type<tc>, window_params = [{transform_indices = @transform_0, window_bounds = array<i64: 1, 256>}, {pipeline_mode = #tpu.pipeline_mode<synchronous>, transform_indices = @transform_1, window_bounds = array<i64: 96, 256>}, {pipeline_mode = #tpu.pipeline_mode<synchronous>, transform_indices = @transform_2, window_bounds = array<i64: 96, 32>}, {pipeline_mode = #tpu.pipeline_mode<synchronous>, transform_indices = @transform_3, window_bounds = array<i64: 129, 1>}, {transform_indices = @transform_4, window_bounds = array<i64: 1, 256>}]} {
    %c0 = arith.constant 0 : index
    %c0_0 = arith.constant 0 : index
    %0 = vector.load %arg4[%c0, %c0_0] : memref<129x1xf32, #tpu.memory_space<vmem>>, vector<129x1xf32>
    %c0_1 = arith.constant 0 : index
    %c0_2 = arith.constant 0 : index
    %1 = vector.load %arg1[%c0_1, %c0_2] : memref<1x256xi32, #tpu.memory_space<vmem>>, vector<1x256xi32>
    %2 = tpu.iota {dimensions = array<i32: 0>} : vector<256x256xi32>
    %3 = vector.broadcast %1 : vector<1x256xi32> to vector<256x256xi32>
    %4 = arith.cmpi eq, %2, %3 : vector<256x256xi32>
    %5 = arith.extui %4 : vector<256x256xi1> to vector<256x256xi32>
    %6 = arith.sitofp %5 : vector<256x256xi32> to vector<256x256xf32>
    %c0_3 = arith.constant 0 : index
    %c0_4 = arith.constant 0 : index
    %7 = vector.load %arg2[%c0_3, %c0_4] : memref<96x256xf32, #tpu.memory_space<vmem>>, vector<96x256xf32>
    %cst = arith.constant dense<0.000000e+00> : vector<96x256xf32>
    %8 = tpu.matmul %7, %6, %cst {dimension_numbers = #tpu.dot_dimension_numbers<[1], [0], [0], [1], [0, 0, 1, 1], [], []>} : vector<96x256xf32>, vector<256x256xf32>, vector<96x256xf32> -> vector<96x256xf32>
    %9 = vector.extract_strided_slice %8 {offsets = [0, 0], sizes = [32, 256], strides = [1, 1]} : vector<96x256xf32> to vector<32x256xf32>
    %10 = arith.negf %9 : vector<32x256xf32>
    %11 = math.exp %10 : vector<32x256xf32>
    %cst_5 = arith.constant 1.000000e+00 : f32
    %12 = vector.broadcast %cst_5 : f32 to vector<32x256xf32>
    %13 = arith.addf %12, %11 : vector<32x256xf32>
    %14 = arith.divf %12, %13 : vector<32x256xf32>
    %15 = vector.extract_strided_slice %8 {offsets = [32, 0], sizes = [32, 256], strides = [1, 1]} : vector<96x256xf32> to vector<32x256xf32>
    %16 = math.tanh %15 : vector<32x256xf32>
    %17 = vector.extract_strided_slice %8 {offsets = [64, 0], sizes = [32, 256], strides = [1, 1]} : vector<96x256xf32> to vector<32x256xf32>
    %18 = arith.negf %17 : vector<32x256xf32>
    %19 = math.exp %18 : vector<32x256xf32>
    %cst_6 = arith.constant 1.000000e+00 : f32
    %20 = vector.broadcast %cst_6 : f32 to vector<32x256xf32>
    %21 = arith.addf %20, %19 : vector<32x256xf32>
    %22 = arith.divf %20, %21 : vector<32x256xf32>
    %23 = arith.mulf %14, %16 : vector<32x256xf32>
    %24 = math.tanh %23 : vector<32x256xf32>
    %25 = arith.mulf %22, %24 : vector<32x256xf32>
    %26 = vector.extract_strided_slice %0 {offsets = [0, 0], sizes = [96, 1], strides = [1, 1]} : vector<129x1xf32> to vector<96x1xf32>
    %c0_7 = arith.constant 0 : index
    %c0_8 = arith.constant 0 : index
    %27 = vector.load %arg3[%c0_7, %c0_8] : memref<96x32xf32, #tpu.memory_space<vmem>>, vector<96x32xf32>
    %cst_9 = arith.constant dense<0.000000e+00> : vector<96x256xf32>
    %28 = tpu.matmul %27, %25, %cst_9 {dimension_numbers = #tpu.dot_dimension_numbers<[1], [0], [0], [1], [0, 0, 1, 1], [], []>} : vector<96x32xf32>, vector<32x256xf32>, vector<96x256xf32> -> vector<96x256xf32>
    %29 = vector.broadcast %26 : vector<96x1xf32> to vector<96x256xf32>
    %30 = arith.addf %28, %29 : vector<96x256xf32>
    %31 = vector.extract_strided_slice %30 {offsets = [0, 0], sizes = [32, 256], strides = [1, 1]} : vector<96x256xf32> to vector<32x256xf32>
    %32 = arith.negf %31 : vector<32x256xf32>
    %33 = math.exp %32 : vector<32x256xf32>
    %cst_10 = arith.constant 1.000000e+00 : f32
    %34 = vector.broadcast %cst_10 : f32 to vector<32x256xf32>
    %35 = arith.addf %34, %33 : vector<32x256xf32>
    %36 = arith.divf %34, %35 : vector<32x256xf32>
    %37 = vector.extract_strided_slice %30 {offsets = [32, 0], sizes = [32, 256], strides = [1, 1]} : vector<96x256xf32> to vector<32x256xf32>
    %38 = math.tanh %37 : vector<32x256xf32>
    %39 = vector.extract_strided_slice %30 {offsets = [64, 0], sizes = [32, 256], strides = [1, 1]} : vector<96x256xf32> to vector<32x256xf32>
    %40 = arith.negf %39 : vector<32x256xf32>
    %41 = math.exp %40 : vector<32x256xf32>
    %cst_11 = arith.constant 1.000000e+00 : f32
    %42 = vector.broadcast %cst_11 : f32 to vector<32x256xf32>
    %43 = arith.addf %42, %41 : vector<32x256xf32>
    %44 = arith.divf %42, %43 : vector<32x256xf32>
    %45 = arith.mulf %36, %38 : vector<32x256xf32>
    %46 = math.tanh %45 : vector<32x256xf32>
    %47 = arith.mulf %44, %46 : vector<32x256xf32>
    %48 = vector.extract_strided_slice %0 {offsets = [96, 0], sizes = [32, 1], strides = [1, 1]} : vector<129x1xf32> to vector<32x1xf32>
    %49 = vector.extract_strided_slice %0 {offsets = [128, 0], sizes = [1, 1], strides = [1, 1]} : vector<129x1xf32> to vector<1x1xf32>
    %50 = vector.broadcast %48 : vector<32x1xf32> to vector<32x256xf32>
    %51 = arith.mulf %47, %50 : vector<32x256xf32>
    %cst_12 = arith.constant dense<0.000000e+00> : vector<256xf32>
    %52 = vector.multi_reduction <add>, %51, %cst_12 [0] : vector<32x256xf32> to vector<256xf32>
    %53 = vector.shape_cast %52 : vector<256xf32> to vector<1x256xf32>
    %54 = vector.broadcast %49 : vector<1x1xf32> to vector<1x256xf32>
    %55 = arith.addf %53, %54 : vector<1x256xf32>
    %c0_13 = arith.constant 0 : index
    %c0_14 = arith.constant 0 : index
    %56 = vector.load %arg5[%c0_13, %c0_14] : memref<1x256xf32, #tpu.memory_space<vmem>>, vector<1x256xf32>
    tpu.vector_store %arg5[%c0_13, %c0_14], %55 {strides = array<i32>} : memref<1x256xf32, #tpu.memory_space<vmem>>, vector<1x256xf32>,
    return
  }
  func.func @transform_0(%arg0: i32) -> (i32, i32) {
    %c0_i32 = arith.constant 0 : i32
    %c0_i32_0 = arith.constant 0 : i32
    return %c0_i32, %arg0 : i32, i32
  }
  func.func @transform_1(%arg0: i32) -> (i32, i32) {
    %c0_i32 = arith.constant 0 : i32
    %c0_i32_0 = arith.constant 0 : i32
    %c0_i32_1 = arith.constant 0 : i32
    return %c0_i32, %c0_i32_0 : i32, i32
  }
  func.func @transform_2(%arg0: i32) -> (i32, i32) {
    %c0_i32 = arith.constant 0 : i32
    %c0_i32_0 = arith.constant 0 : i32
    %c0_i32_1 = arith.constant 0 : i32
    return %c0_i32, %c0_i32_0 : i32, i32
  }
  func.func @transform_3(%arg0: i32) -> (i32, i32) {
    %c0_i32 = arith.constant 0 : i32
    %c0_i32_0 = arith.constant 0 : i32
    %c0_i32_1 = arith.constant 0 : i32
    return %c0_i32, %c0_i32_0 : i32, i32
  }
  func.func @transform_4(%arg0: i32) -> (i32, i32) {
    %c0_i32 = arith.constant 0 : i32
    %c0_i32_0 = arith.constant 0 : i32
    return %c0_i32, %arg0 : i32, i32
  }
}

</mosaic_0001>

<bundles_post_ra>
// kernel: tpu_custom_call.1
= control target key start
LH: loop header
LB: loop body
LE: loop exit
PB: predicated region body
PF: predicated region fallthrough
CT: control target
= control target key end

     0   :  { %v36_v0 = vlaneseq  ;;  %v1489_v13 = vmov 1.0|1.0   ;;  %s1865_s0 = inlined_call_operand.vmem [shape: s32[1,256], index: 0, kind: input, shape index: {}]   ;;  %s1866_s1 = inlined_call_operand.vmem [shape: f32[96,256], index: 1, kind: input, shape index: {}]   ;;  %s1867_s2 = inlined_call_operand.vmem [shape: f32[96,32], index: 2, kind: input, shape index: {}]   ;;  %s1868_s3 = inlined_call_operand.vmem [shape: f32[129,1], index: 3, kind: input, shape index: {}]   ;;  %s1869_s4 = inlined_call_operand.hbm [shape: f32[1,256], index: 4, kind: output, shape index: {}]  }
   0x1   :  { %v270_v1 = vld [vmem:[%s1866_s1 + $0x8] sm:$0xff]  ;;  %v35_v3 = vld [vmem:[%s1865_s0] sm:$0x3] }
   0x2   :  { %357 = vmatprep.mubr.f32.mxu0 %v270_v1  ;;  %v1523_v2 = vshrl.u32 %v36_v0, 7 }
   0x4   :  { %v38_v4 = vadd.s32 8, %v1523_v2  ;;  %v75_v5 = vsub.s32 1, %v1523_v2  ;;  %v71_v6 = vsub.s32 0, %v1523_v2  ;;  %v39_v7 = vadd.s32 16, %v1523_v2 }
   0x5   :  { %v40_v8 = vadd.s32 24, %v1523_v2  ;;  %v41_v11 = vadd.s32 32, %v1523_v2  ;;  %v42_v12 = vadd.s32 40, %v1523_v2  ;;  %v43_v14 = vadd.s32 48, %v1523_v2 }
   0x6   :  { %v1533_v9 = vrot.slane %v35_v3, %v75_v5  ;;  %v1535_v10 = vrot.slane %v35_v3, %v71_v6  ;;  %v44_v15 = vadd.s32 56, %v1523_v2  ;;  %v45_v16 = vadd.s32 64, %v1523_v2 }
   0x7   :  { %v46_v17 = vadd.s32 72, %v1523_v2  ;;  %v47_v18 = vadd.s32 80, %v1523_v2  ;;  %v48_v19 = vadd.s32 88, %v1523_v2  ;;  %v49_v20 = vadd.s32 96, %v1523_v2 }
   0x8   :  { %vm78_vm0 = vcmp.eq.s32.totalorder %v1523_v2, %v1533_v9  ;;  %vm80_vm1 = vcmp.eq.s32.totalorder %v38_v4, %v1533_v9  ;;  %vm77_vm2 = vcmp.eq.s32.totalorder %v1523_v2, %v1535_v10  ;;  %vm79_vm3 = vcmp.eq.s32.totalorder %v38_v4, %v1535_v10 }
   0x9   :  { %vm1194_vm4 = vmpackc.low %vm80_vm1, %vm78_vm0  ;;  %vm82_vm5 = vcmp.eq.s32.totalorder %v39_v7, %v1533_v9  ;;  %vm84_vm6 = vcmp.eq.s32.totalorder %v40_v8, %v1533_v9  ;;  %vm81_vm7 = vcmp.eq.s32.totalorder %v39_v7, %v1535_v10  ;;  %vm83_vm8 = vcmp.eq.s32.totalorder %v40_v8, %v1535_v10 }
   0xa   :  { %1195 = vmatprep.subr.msk.bf16.mxu0 %vm1194_vm4, %v1489_v13  ;;  %vm1196_vm9 = vmpackc.low %vm79_vm3, %vm77_vm2  ;;  %vm86_vm10 = vcmp.eq.s32.totalorder %v41_v11, %v1533_v9  ;;  %vm88_vm11 = vcmp.eq.s32.totalorder %v42_v12, %v1533_v9  ;;  %vm85_vm15 = vcmp.eq.s32.totalorder %v41_v11, %v1535_v10  ;;  %vm87_vm0 = vcmp.eq.s32.totalorder %v42_v12, %v1535_v10 }
   0xb   :  { %1197 = vmatpush1.bf16.msk.msra.mxu0 %vm1196_vm9, %v1489_v13  ;;  %vm1198_vm12 = vmpackc.low %vm84_vm6, %vm82_vm5  ;;  %vm90_vm1 = vcmp.eq.s32.totalorder %v43_v14, %v1533_v9  ;;  %vm92_vm2 = vcmp.eq.s32.totalorder %v44_v15, %v1533_v9  ;;  %vm89_vm5 = vcmp.eq.s32.totalorder %v43_v14, %v1535_v10  ;;  %vm91_vm6 = vcmp.eq.s32.totalorder %v44_v15, %v1535_v10 }
   0xc   :  { %1199 = vmatprep.subr.msk.bf16.mxu0 %vm1198_vm12, %v1489_v13  ;;  %vm1200_vm13 = vmpackc.low %vm83_vm8, %vm81_vm7  ;;  %vm94_vm7 = vcmp.eq.s32.totalorder %v45_v16, %v1533_v9  ;;  %vm96_vm8 = vcmp.eq.s32.totalorder %v46_v17, %v1533_v9  ;;  %vm95_vm12 = vcmp.eq.s32.totalorder %v46_v17, %v1535_v10  ;;  %v50_v21 = vadd.s32 104, %v1523_v2 }
   0xd   :  { %vm1202_vm14 = vmpackc.low %vm88_vm11, %vm86_vm10  ;;  %vm93_vm11 = vcmp.eq.s32.totalorder %v45_v16, %v1535_v10  ;;  %v51_v22 = vadd.s32 112, %v1523_v2  ;;  %v52_v23 = vadd.s32 120, %v1523_v2  ;;  %v53_v24 = vadd.s32 128, %v1523_v2 }
   0xe   :  { %vm1204_vm3 = vmpackc.low %vm87_vm0, %vm85_vm15  ;;  %v54_v25 = vadd.s32 136, %v1523_v2  ;;  %v55_v26 = vadd.s32 144, %v1523_v2  ;;  %v56_v27 = vadd.s32 152, %v1523_v2  ;;  %v57_v28 = vadd.s32 160, %v1523_v2 }
   0xf   :  { %1201 = vmatpush1.bf16.msk.msra.mxu0 %vm1200_vm13, %v1489_v13  ;;  %vm1206_vm4 = vmpackc.low %vm92_vm2, %vm90_vm1  ;;  %vm98_vm13 = vcmp.eq.s32.totalorder %v47_v18, %v1533_v9  ;;  %vm97_vm1 = vcmp.eq.s32.totalorder %v47_v18, %v1535_v10  ;;  %vm99_vm2 = vcmp.eq.s32.totalorder %v48_v19, %v1535_v10  ;;  %v58_v29 = vadd.s32 168, %v1523_v2 }
  0x10   :  { %1203 = vmatprep.subr.msk.bf16.mxu0 %vm1202_vm14, %v1489_v13  ;;  %vm1208_vm9 = vmpackc.low %vm91_vm6, %vm89_vm5  ;;  %vm100_vm14 = vcmp.eq.s32.totalorder %v48_v19, %v1533_v9 }
  0x11   :  { %vm1210_vm10 = vmpackc.low %vm96_vm8, %vm94_vm7  ;;  %vm101_vm7 = vcmp.eq.s32.totalorder %v49_v20, %v1535_v10  ;;  %vm103_vm8 = vcmp.eq.s32.totalorder %v50_v21, %v1535_v10 }
  0x12   :  { %vm1212_vm15 = vmpackc.low %vm95_vm12, %vm93_vm11 }
  0x13   :  { %1205 = vmatpush1.bf16.msk.msra.mxu0 %vm1204_vm3, %v1489_v13  ;;  %vm1214_vm0 = vmpackc.low %vm100_vm14, %vm98_vm13  ;;  %vm102_vm3 = vcmp.eq.s32.totalorder %v49_v20, %v1533_v9  ;;  %vm105_vm13 = vcmp.eq.s32.totalorder %v51_v22, %v1535_v10  ;;  %vm107_vm14 = vcmp.eq.s32.totalorder %v52_v23, %v1535_v10 }
  0x14   :  { %1207 = vmatprep.subr.msk.bf16.mxu0 %vm1206_vm4, %v1489_v13  ;;  %vm104_vm4 = vcmp.eq.s32.totalorder %v50_v21, %v1533_v9  ;;  %vm1216_vm5 = vmpackc.low %vm99_vm2, %vm97_vm1  ;;  %vm109_vm2 = vcmp.eq.s32.totalorder %v53_v24, %v1535_v10 }
  0x15   :  { %vm1218_vm6 = vmpackc.low %vm104_vm4, %vm102_vm3  ;;  %vm111_vm3 = vcmp.eq.s32.totalorder %v54_v25, %v1535_v10 }
  0x16   :  { %vm1220_vm11 = vmpackc.low %vm103_vm8, %vm101_vm7 }
  0x17   :  { %1209 = vmatpush1.bf16.msk.msra.mxu0 %vm1208_vm9, %v1489_v13  ;;  %vm106_vm9 = vcmp.eq.s32.totalorder %v51_v22, %v1533_v9  ;;  %vm1224_vm1 = vmpackc.low %vm107_vm14, %vm105_vm13 }
  0x18   :  { %1211 = vmatprep.subr.msk.bf16.mxu0 %vm1210_vm10, %v1489_v13  ;;  %vm108_vm10 = vcmp.eq.s32.totalorder %v52_v23, %v1533_v9  ;;  %vm1228_vm7 = vmpackc.low %vm111_vm3, %vm109_vm2 }
  0x19   :  { %vm1222_vm12 = vmpackc.low %vm108_vm10, %vm106_vm9  ;;  %vm113_vm9 = vcmp.eq.s32.totalorder %v55_v26, %v1535_v10  ;;  %vm115_vm10 = vcmp.eq.s32.totalorder %v56_v27, %v1535_v10 }
  0x1b   :  { %1213 = vmatpush1.bf16.msk.msra.mxu0 %vm1212_vm15, %v1489_v13  ;;  %vm110_vm15 = vcmp.eq.s32.totalorder %v53_v24, %v1533_v9 }
  0x1c   :  { %1215 = vmatprep.subr.msk.bf16.mxu0 %vm1214_vm0, %v1489_v13  ;;  %vm112_vm0 = vcmp.eq.s32.totalorder %v54_v25, %v1533_v9 }
  0x1d   :  { %vm1226_vm4 = vmpackc.low %vm112_vm0, %vm110_vm15 }
  0x1f   :  { %1217 = vmatpush1.bf16.msk.msra.mxu0 %vm1216_vm5, %v1489_v13  ;;  %vm114_vm5 = vcmp.eq.s32.totalorder %v55_v26, %v1533_v9 }
  0x20   :  { %1219 = vmatprep.subr.msk.bf16.mxu0 %vm1218_vm6, %v1489_v13  ;;  %vm116_vm6 = vcmp.eq.s32.totalorder %v56_v27, %v1533_v9 }
  0x21   :  { %vm1230_vm8 = vmpackc.low %vm116_vm6, %vm114_vm5 }
  0x23   :  { %1221 = vmatpush1.bf16.msk.msra.mxu0 %vm1220_vm11, %v1489_v13 }
  0x24   :  { %1223 = vmatprep.subr.msk.bf16.mxu0 %vm1222_vm12, %v1489_v13 }
  0x27   :  { %1225 = vmatpush1.bf16.msk.msra.mxu0 %vm1224_vm1, %v1489_v13 }
  0x28   :  { %1227 = vmatprep.subr.msk.bf16.mxu0 %vm1226_vm4, %v1489_v13 }
  0x29   :  { %9 = vsyncpa [#allocation3], 0  ;;  %vm118_vm11 = vcmp.eq.s32.totalorder %v57_v28, %v1533_v9  ;;  %vm120_vm12 = vcmp.eq.s32.totalorder %v58_v29, %v1533_v9  ;;  %v59_v30 = vadd.s32 176, %v1523_v2  ;;  %v60_v31 = vadd.s32 184, %v1523_v2  ;;  %v269_v40 = vld [vmem:[%s1866_s1] sm:$0xff]  ;;  %v272_v41 = vld [vmem:[%s1866_s1 + $0x18] sm:$0xff] }
  0x2a   :  { %vm1232_vm13 = vmpackc.low %vm115_vm10, %vm113_vm9  ;;  %vm117_vm15 = vcmp.eq.s32.totalorder %v57_v28, %v1535_v10  ;;  %vm119_vm0 = vcmp.eq.s32.totalorder %v58_v29, %v1535_v10  ;;  %v61_v32 = vadd.s32 192, %v1523_v2  ;;  %v62_v33 = vadd.s32 200, %v1523_v2  ;;  %v271_v42 = vld [vmem:[%s1866_s1 + $0x10] sm:$0xff]  ;;  %v274_v43 = vld [vmem:[%s1866_s1 + $0x28] sm:$0xff] }
  0x2b   :  { %1229 = vmatpush1.bf16.msk.msra.mxu0 %vm1228_vm7, %v1489_v13  ;;  %vm1234_vm14 = vmpackc.low %vm120_vm12, %vm118_vm11  ;;  %vm122_vm1 = vcmp.eq.s32.totalorder %v59_v30, %v1533_v9  ;;  %vm124_vm2 = vcmp.eq.s32.totalorder %v60_v31, %v1533_v9  ;;  %vm121_vm5 = vcmp.eq.s32.totalorder %v59_v30, %v1535_v10  ;;  %vm123_vm6 = vcmp.eq.s32.totalorder %v60_v31, %v1535_v10  ;;  %v273_v44 = vld [vmem:[%s1866_s1 + $0x20] sm:$0xff]  ;;  %v276_v45 = vld [vmem:[%s1866_s1 + $0x38] sm:$0xff] }
  0x2c   :  { %1231 = vmatprep.subr.msk.bf16.mxu0 %vm1230_vm8, %v1489_v13  ;;  %vm1236_vm3 = vmpackc.low %vm119_vm0, %vm117_vm15  ;;  %vm126_vm7 = vcmp.eq.s32.totalorder %v61_v32, %v1533_v9  ;;  %vm128_vm8 = vcmp.eq.s32.totalorder %v62_v33, %v1533_v9  ;;  %v63_v34 = vadd.s32 208, %v1523_v2  ;;  %v64_v35 = vadd.s32 216, %v1523_v2  ;;  %v275_v46 = vld [vmem:[%s1866_s1 + $0x30] sm:$0xff]  ;;  %v278_v47 = vld [vmem:[%s1866_s1 + $0x48] sm:$0xff] }
  0x2d   :  { %vm1238_vm4 = vmpackc.low %vm124_vm2, %vm122_vm1  ;;  %vm125_vm11 = vcmp.eq.s32.totalorder %v61_v32, %v1535_v10  ;;  %vm127_vm12 = vcmp.eq.s32.totalorder %v62_v33, %v1535_v10  ;;  %v65_v36 = vadd.s32 224, %v1523_v2  ;;  %v66_v37 = vadd.s32 232, %v1523_v2  ;;  %v277_v48 = vld [vmem:[%s1866_s1 + $0x40] sm:$0xff]  ;;  %v280_v49 = vld [vmem:[%s1866_s1 + $0x58] sm:$0xff] }
  0x2e   :  { %vm1240_vm9 = vmpackc.low %vm123_vm6, %vm121_vm5  ;;  %vm129_vm1 = vcmp.eq.s32.totalorder %v63_v34, %v1535_v10  ;;  %vm131_vm2 = vcmp.eq.s32.totalorder %v64_v35, %v1535_v10  ;;  %v67_v38 = vadd.s32 240, %v1523_v2  ;;  %v68_v39 = vadd.s32 248, %v1523_v2  ;;  %v279_v50 = vld [vmem:[%s1866_s1 + $0x50] sm:$0xff]  ;;  %v282_v51 = vld [vmem:[%s1866_s1 + $0x68] sm:$0xff] }
  0x2f   :  { %1233 = vmatpush1.bf16.msk.msra.mxu0 %vm1232_vm13, %v1489_v13  ;;  %vm1242_vm10 = vmpackc.low %vm128_vm8, %vm126_vm7  ;;  %vm130_vm13 = vcmp.eq.s32.totalorder %v63_v34, %v1533_v9  ;;  %vm133_vm7 = vcmp.eq.s32.totalorder %v65_v36, %v1535_v10  ;;  %vm135_vm8 = vcmp.eq.s32.totalorder %v66_v37, %v1535_v10  ;;  %v281_v52 = vld [vmem:[%s1866_s1 + $0x60] sm:$0xff]  ;;  %v284_v53 = vld [vmem:[%s1866_s1 + $0x78] sm:$0xff]  ;;  %v1490_v63 = vmov 0.0  }
  0x30   :  { %1235 = vmatprep.subr.msk.bf16.mxu0 %vm1234_vm14, %v1489_v13  ;;  %vm132_vm14 = vcmp.eq.s32.totalorder %v64_v35, %v1533_v9  ;;  %vm1244_vm15 = vmpackc.low %vm127_vm12, %vm125_vm11  ;;  %v283_v54 = vld [vmem:[%s1866_s1 + $0x70] sm:$0xff]  ;;  %v286_v55 = vld [vmem:[%s1866_s1 + $0x88] sm:$0xff]  ;;  %731 = vmatprep.mubr.f32.mxu1 %v1490_v63  ;;  %v1491_v4 = vmov 0  }
  0x31   :  { %vm1246_vm0 = vmpackc.low %vm132_vm14, %vm130_vm13  ;;  %vm137_vm13 = vcmp.eq.s32.totalorder %v67_v38, %v1535_v10  ;;  %vm139_vm14 = vcmp.eq.s32.totalorder %v68_v39, %v1535_v10  ;;  %v285_v56 = vld [vmem:[%s1866_s1 + $0x80] sm:$0xff]  ;;  %v288_v57 = vld [vmem:[%s1866_s1 + $0x98] sm:$0xff]  ;;  %1271 = vset.pattern.permute.xlu0 %v1491_v4  ;;  %1272 = vset.pattern.permute.xlu1 %v1491_v4 }
  0x32   :  { %vm1248_vm5 = vmpackc.low %vm131_vm2, %vm129_vm1  ;;  %v287_v58 = vld [vmem:[%s1866_s1 + $0x90] sm:$0xff]  ;;  %v290_v59 = vld [vmem:[%s1866_s1 + $0xa8] sm:$0xff]  ;;  %vm1005_vm1 = vcmp.lt.s32.totalorder %v36_v0, 256 }
  0x33   :  { %1237 = vmatpush1.bf16.msk.msra.mxu0 %vm1236_vm3, %v1489_v13  ;;  %vm134_vm3 = vcmp.eq.s32.totalorder %v65_v36, %v1533_v9  ;;  %vm1252_vm11 = vmpackc.low %vm135_vm8, %vm133_vm7  ;;  %v289_v60 = vld [vmem:[%s1866_s1 + $0xa0] sm:$0xff]  ;;  %v292_v61 = vld [vmem:[%s1866_s1 + $0xb8] sm:$0xff] }
  0x34   :  { %1239 = vmatprep.subr.msk.bf16.mxu0 %vm1238_vm4, %v1489_v13  ;;  %vm136_vm4 = vcmp.eq.s32.totalorder %v66_v37, %v1533_v9  ;;  %v291_v62 = vld [vmem:[%s1866_s1 + $0xb0] sm:$0xff]  ;;  %v18_v1 = vld [vmem:[%s1868_s3] sm:$0xff]  ;;  %v19_v6 = vld [vmem:[%s1868_s3 + $0x8] sm:$0xff] }
  0x35   :  { %vm1250_vm6 = vmpackc.low %vm136_vm4, %vm134_vm3  ;;  %v20_v3 = vld [vmem:[%s1868_s3 + $0x10] sm:$0xff]  ;;  %572 = vperm.xlu0 %1271, %v18_v1   ;;  %v21_v7 = vld [vmem:[%s1868_s3 + $0x18] sm:$0xff] }
  0x36   :  { %582 = vperm.xlu1 %1272, %v20_v3   ;;  %v26_v12 = vld [vmem:[%s1868_s3 + $0x40] sm:$0xff]  ;;  %v23_v19 = vld [vmem:[%s1868_s3 + $0x28] sm:$0xff]  ;;  %v28_v24 = vld [vmem:[%s1868_s3 + $0x50] sm:$0xff] }
  0x37   :  { %1241 = vmatpush1.bf16.msk.msra.mxu0 %vm1240_vm9, %v1489_v13  ;;  %vm138_vm9 = vcmp.eq.s32.totalorder %v67_v38, %v1533_v9  ;;  %v22_v18 = vld [vmem:[%s1868_s3 + $0x20] sm:$0xff]  ;;  %v24_v25 = vld [vmem:[%s1868_s3 + $0x30] sm:$0xff]  ;;  %v29_v34 = vld [vmem:[%s1868_s3 + $0x58] sm:$0xff] }
  0x38   :  { %1243 = vmatprep.subr.msk.bf16.mxu0 %vm1242_vm10, %v1489_v13  ;;  %vm140_vm10 = vcmp.eq.s32.totalorder %v68_v39, %v1533_v9  ;;  %v25_v35 = vld [vmem:[%s1868_s3 + $0x38] sm:$0xff] }
  0x39   :  { %vm1254_vm12 = vmpackc.low %vm140_vm10, %vm138_vm9  ;;  %577 = vperm.xlu0 %1271, %v19_v6  }
  0x3a   :  { %587 = vperm.xlu1 %1272, %v21_v7  }
  0x3b   :  { %1245 = vmatpush1.bf16.msk.msra.mxu0 %vm1244_vm15, %v1489_v13  ;;  %vm1256_vm15 = vmpackc.low %vm139_vm14, %vm137_vm13 }
  0x3c   :  { %1247 = vmatprep.subr.msk.bf16.mxu0 %vm1246_vm0, %v1489_v13  ;;  %vm630_vm0 = vcmask 261120  }
  0x3d   :  { %612 = vperm.xlu0 %1271, %v26_v12  }
  0x3f   :  { %1249 = vmatpush1.bf16.msk.msra.mxu0 %vm1248_vm5, %v1489_v13 }
  0x40   :  { %1251 = vmatprep.subr.msk.bf16.mxu0 %vm1250_vm6, %v1489_v13 }
  0x41   :  { %592 = vperm.xlu0 %1271, %v22_v18  }
  0x43   :  { %1253 = vmatpush1.bf16.msk.msra.mxu0 %vm1252_vm11, %v1489_v13 }
  0x44   :  { %1255 = vmatprep.subr.msk.bf16.mxu0 %vm1254_vm12, %v1489_v13 }
  0x45   :  { %622 = vperm.xlu0 %1271, %v28_v24  }
  0x47   :  { %1257 = vmatpush1.bf16.msk.msra.mxu0 %vm1256_vm15, %v1489_v13  ;;  %v27_v13 = vld [vmem:[%s1868_s3 + $0x48] sm:$0xff] }
  0x48   :  { %617 = vperm.xlu1 %1272, %v27_v13  }
  0x49   :  { %627 = vperm.xlu0 %1271, %v29_v34  }
  0x4a   :  { %358 = vmatmul.mubr.f32.vlgmr.msra.gmra.mrb[0].mxu0 %v269_v40 }
  0x4b   :  { %363 = vmatprep.mubr.f32.mxu0 %v272_v41 }
  0x4c   :  { %597 = vperm.xlu1 %1272, %v23_v19  }
  0x4e   :  { %364 = vmatmul.mubr.f32.gmra.mrb[2].mxu0 %v271_v42  ;;  %v30_v42 = vld [vmem:[%s1868_s3 + $0x60] sm:$0xff] }
  0x4f   :  { %369 = vmatprep.mubr.f32.mxu0 %v274_v43  ;;  %v31_v43 = vld [vmem:[%s1868_s3 + $0x68] sm:$0xff]  ;;  %934 = vperm.xlu0 %1271, %v30_v42  }
  0x50   :  { %602 = vperm.xlu1 %1272, %v24_v25  }
  0x52   :  { %370 = vmatmul.mubr.f32.gmra.mrb[4].mxu0 %v273_v44 }
  0x53   :  { %375 = vmatprep.mubr.f32.mxu0 %v276_v45 }
  0x54   :  { %607 = vperm.xlu1 %1272, %v25_v35  }
  0x56   :  { %376 = vmatmul.mubr.f32.gmra.mrb[6].mxu0 %v275_v46 }
  0x57   :  { %381 = vmatprep.mubr.f32.mxu0 %v278_v47 }
  0x58   :  { %939 = vperm.xlu1 %1272, %v31_v43  }
  0x5a   :  { %382 = vmatmul.mubr.f32.gmra.mrb[8].mxu0 %v277_v48 }
  0x5b   :  { %387 = vmatprep.mubr.f32.mxu0 %v280_v49 }
  0x5e   :  { %388 = vmatmul.mubr.f32.gmra.mrb[10].mxu0 %v279_v50  ;;  %v32_v50 = vld [vmem:[%s1868_s3 + $0x70] sm:$0xff] }
  0x5f   :  { %393 = vmatprep.mubr.f32.mxu0 %v282_v51  ;;  %v33_v51 = vld [vmem:[%s1868_s3 + $0x78] sm:$0xff]  ;;  %944 = vperm.xlu0 %1271, %v32_v50  }
  0x60   :  { %949 = vperm.xlu1 %1272, %v33_v51  }
  0x62   :  { %394 = vmatmul.mubr.f32.gmra.mrb[12].mxu0 %v281_v52 }
  0x63   :  { %399 = vmatprep.mubr.f32.mxu0 %v284_v53 }
  0x66   :  { %400 = vmatmul.mubr.f32.gmra.mrb[14].mxu0 %v283_v54 }
  0x67   :  { %405 = vmatprep.mubr.f32.mxu0 %v286_v55 }
  0x6a   :  { %406 = vmatmul.mubr.f32.gmra.mrb[16].mxu0 %v285_v56 }
  0x6b   :  { %411 = vmatprep.mubr.f32.mxu0 %v288_v57 }
  0x6e   :  { %412 = vmatmul.mubr.f32.gmra.mrb[18].mxu0 %v287_v58 }
  0x6f   :  { %417 = vmatprep.mubr.f32.mxu0 %v290_v59  ;;  %v34_v59 = vld [vmem:[%s1868_s3 + $0x80] sm:$0x1] }
  0x70   :  { %980 = vperm.xlu0 %1271, %v34_v59  }
  0x72   :  { %418 = vmatmul.mubr.f32.gmra.mrb[20].mxu0 %v289_v60 }
  0x73   :  { %423 = vmatprep.mubr.f32.mxu0 %v292_v61 }
  0x76   :  { %424 = vmatmul.mubr.f32.gmra.mrb[22].mxu0 %v291_v62 }
 0x11d   :  { %v359_v5 = vpop.f32.mrb[0].mxu0 }
 0x11e   :  { %v1150_v8 = vmul.f32 -1.442695, %v359_v5  ;;  %v361_v9 = vpop.f32.mrb[1].mxu0 }
 0x11f   :  { %v1151_v10 = vmul.f32 -1.442695, %v361_v9 }
 0x120   :  { %1273 = vpow2.f32 %v1150_v8 }
 0x121   :  { %1275 = vpow2.f32 %v1151_v10  ;;  %v365_v11 = vpop.f32.mrb[2].mxu0 }
 0x122   :  { %v1152_v14 = vmul.f32 -1.442695, %v365_v11  ;;  %v367_v15 = vpop.f32.mrb[3].mxu0 }
 0x123   :  { %v1153_v16 = vmul.f32 -1.442695, %v367_v15 }
 0x124   :  { %1277 = vpow2.f32 %v1152_v14 }
 0x125   :  { %1279 = vpow2.f32 %v1153_v16  ;;  %v371_v17 = vpop.f32.mrb[4].mxu0 }
 0x126   :  { %v1154_v20 = vmul.f32 -1.442695, %v371_v17  ;;  %v373_v21 = vpop.f32.mrb[5].mxu0 }
 0x127   :  { %v1155_v22 = vmul.f32 -1.442695, %v373_v21 }
 0x128   :  { %1281 = vpow2.f32 %v1154_v20 }
 0x129   :  { %1283 = vpow2.f32 %v1155_v22  ;;  %v377_v23 = vpop.f32.mrb[6].mxu0 }
 0x12a   :  { %v1274_v26 = vpop.eup %1273  ;;  %v1156_v27 = vmul.f32 -1.442695, %v377_v23  ;;  %v379_v28 = vpop.f32.mrb[7].mxu0 }
 0x12b   :  { %v1276_v29 = vpop.eup %1275  ;;  %v454_v30 = vadd.f32 1.0, %v1274_v26  ;;  %v1157_v31 = vmul.f32 -1.442695, %v379_v28 }
 0x12c   :  { %v455_v32 = vadd.f32 1.0, %v1276_v29  ;;  %1285 = vpow2.f32 %v1156_v27 }
 0x12d   :  { %1287 = vrcp.f32 %v454_v30  ;;  %v383_v33 = vpop.f32.mrb[8].mxu0 }
 0x12e   :  { %v1278_v36 = vpop.eup %1277  ;;  %1289 = vrcp.f32 %v455_v32  ;;  %v385_v37 = vpop.f32.mrb[9].mxu0 }
 0x12f   :  { %v1280_v38 = vpop.eup %1279  ;;  %v456_v39 = vadd.f32 1.0, %v1278_v36  ;;  %1291 = vpow2.f32 %v1157_v31 }
 0x130   :  { %v457_v40 = vadd.f32 1.0, %v1280_v38  ;;  %1293 = vtanh.f32 %v383_v33 }
 0x131   :  { %1295 = vrcp.f32 %v456_v39  ;;  %v389_v41 = vpop.f32.mrb[10].mxu0 }
 0x132   :  { %v1282_v44 = vpop.eup %1281  ;;  %1297 = vrcp.f32 %v457_v40  ;;  %v391_v45 = vpop.f32.mrb[11].mxu0 }
 0x133   :  { %v1284_v46 = vpop.eup %1283  ;;  %v458_v47 = vadd.f32 1.0, %v1282_v44  ;;  %1299 = vtanh.f32 %v385_v37 }
 0x134   :  { %v459_v48 = vadd.f32 1.0, %v1284_v46  ;;  %1301 = vtanh.f32 %v389_v41 }
 0x135   :  { %1303 = vrcp.f32 %v458_v47  ;;  %v395_v49 = vpop.f32.mrb[12].mxu0 }
 0x136   :  { %v1286_v52 = vpop.eup %1285  ;;  %1305 = vrcp.f32 %v459_v48  ;;  %v397_v53 = vpop.f32.mrb[13].mxu0 }
 0x137   :  { %v1288_v54 = vpop.eup %1287  ;;  %v460_v55 = vadd.f32 1.0, %v1286_v52  ;;  %1307 = vtanh.f32 %v391_v45 }
 0x138   :  { %v1290_v56 = vpop.eup %1289  ;;  %1309 = vtanh.f32 %v395_v49 }
 0x139   :  { %v1292_v57 = vpop.eup %1291  ;;  %1311 = vrcp.f32 %v460_v55  ;;  %v401_v58 = vpop.f32.mrb[14].mxu0 }
 0x13a   :  { %v1294_v60 = vpop.eup %1293  ;;  %v461_v61 = vadd.f32 1.0, %v1292_v57  ;;  %1313 = vtanh.f32 %v397_v53  ;;  %v403_v62 = vpop.f32.mrb[15].mxu0 }
 0x13b   :  { %v1296_v1 = vpop.eup %1295  ;;  %v534_v3 = vmul.f32 %v1294_v60, %v1288_v54  ;;  %1315 = vtanh.f32 %v401_v58 }
 0x13c   :  { %v1298_v4 = vpop.eup %1297  ;;  %1317 = vrcp.f32 %v461_v61 }
 0x13d   :  { %v1300_v5 = vpop.eup %1299  ;;  %v407_v6 = vpop.f32.mrb[16].mxu0  ;;  %1319 = vtanh.f32 %v403_v62 }
 0x13e   :  { %v1302_v7 = vpop.eup %1301  ;;  %v535_v8 = vmul.f32 %v1300_v5, %v1290_v56  ;;  %v1158_v9 = vmul.f32 -1.442695, %v407_v6  ;;  %v409_v10 = vpop.f32.mrb[17].mxu0 }
 0x13f   :  { %v1304_v11 = vpop.eup %1303  ;;  %v536_v12 = vmul.f32 %v1302_v7, %v1296_v1  ;;  %v1159_v13 = vmul.f32 -1.442695, %v409_v10 }
 0x140   :  { %v1306_v14 = vpop.eup %1305  ;;  %1321 = vpow2.f32 %v1158_v9 }
 0x141   :  { %v1308_v15 = vpop.eup %1307  ;;  %v413_v16 = vpop.f32.mrb[18].mxu0  ;;  %1323 = vpow2.f32 %v1159_v13 }
 0x142   :  { %v1310_v17 = vpop.eup %1309  ;;  %v537_v18 = vmul.f32 %v1308_v15, %v1298_v4  ;;  %v1160_v19 = vmul.f32 -1.442695, %v413_v16  ;;  %v415_v20 = vpop.f32.mrb[19].mxu0 }
 0x143   :  { %v1312_v21 = vpop.eup %1311  ;;  %v538_v22 = vmul.f32 %v1310_v17, %v1304_v11  ;;  %v1161_v26 = vmul.f32 -1.442695, %v415_v20 }
 0x144   :  { %v1314_v23 = vpop.eup %1313  ;;  %1325 = vpow2.f32 %v1160_v19 }
 0x145   :  { %v1316_v24 = vpop.eup %1315  ;;  %v539_v25 = vmul.f32 %v1314_v23, %v1306_v14  ;;  %v419_v27 = vpop.f32.mrb[20].mxu0  ;;  %1327 = vtanh.f32 %v534_v3  ;;  %v559_v23 = vld [vmem:[%s1867_s2 + $0x8] sm:$0xff] }
 0x146   :  { %v1318_v28 = vpop.eup %1317  ;;  %v540_v29 = vmul.f32 %v1316_v24, %v1312_v21  ;;  %v1162_v30 = vmul.f32 -1.442695, %v419_v27  ;;  %v421_v31 = vpop.f32.mrb[21].mxu0  ;;  %1329 = vtanh.f32 %v535_v8  ;;  %v560_v24 = vld [vmem:[%s1867_s2 + $0x10] sm:$0xff]  ;;  %v563_v27 = vld [vmem:[%s1867_s2 + $0x28] sm:$0xff] }
 0x147   :  { %v1320_v32 = vpop.eup %1319  ;;  %v1163_v33 = vmul.f32 -1.442695, %v421_v31  ;;  %1331 = vpow2.f32 %v1161_v26  ;;  %v562_v26 = vld [vmem:[%s1867_s2 + $0x20] sm:$0xff]  ;;  %v567_v31 = vld [vmem:[%s1867_s2 + $0x48] sm:$0xff] }
 0x148   :  { %v541_v34 = vmul.f32 %v1320_v32, %v1318_v28  ;;  %1333 = vpow2.f32 %v1162_v30  ;;  %v564_v28 = vld [vmem:[%s1867_s2 + $0x30] sm:$0xff]  ;;  %v566_v30 = vld [vmem:[%s1867_s2 + $0x40] sm:$0xff] }
 0x149   :  { %v425_v35 = vpop.f32.mrb[22].mxu0  ;;  %1335 = vtanh.f32 %v536_v12  ;;  %v568_v32 = vld [vmem:[%s1867_s2 + $0x50] sm:$0xff] }
 0x14a   :  { %v1164_v36 = vmul.f32 -1.442695, %v425_v35  ;;  %v427_v37 = vpop.f32.mrb[23].mxu0  ;;  %v1322_v39 = vpop.eup %1321  ;;  %1337 = vpow2.f32 %v1163_v33  ;;  %v569_v33 = vld [vmem:[%s1867_s2 + $0x58] sm:$0xff] }
 0x14b   :  { %v1165_v38 = vmul.f32 -1.442695, %v427_v37  ;;  %v1324_v40 = vpop.eup %1323  ;;  %v510_v41 = vadd.f32 1.0, %v1322_v39  ;;  %v583_v35 = vpop.permute.xlu1 %582 }
 0x14c   :  { %1339 = vpow2.f32 %v1164_v36  ;;  %v511_v42 = vadd.f32 1.0, %v1324_v40 }
 0x14d   :  { %1341 = vpow2.f32 %v1165_v38 }
 0x14e   :  { %1343 = vrcp.f32 %v510_v41  ;;  %v1326_v43 = vpop.eup %1325 }
 0x14f   :  { %1345 = vrcp.f32 %v511_v42  ;;  %v1328_v44 = vpop.eup %1327  ;;  %v512_v45 = vadd.f32 1.0, %v1326_v43  ;;  %v588_v43 = vpop.permute.xlu1 %587 }
 0x150   :  { %1347 = vtanh.f32 %v537_v18  ;;  %v1330_v46 = vpop.eup %1329 }
 0x151   :  { %1349 = vtanh.f32 %v538_v22  ;;  %v1332_v47 = vpop.eup %1331  ;;  %v558_v22 = vld [vmem:[%s1867_s2] sm:$0xff] }
 0x152   :  { %1351 = vrcp.f32 %v512_v45  ;;  %v1334_v48 = vpop.eup %1333  ;;  %v513_v49 = vadd.f32 1.0, %v1332_v47 }
 0x153   :  { %1353 = vtanh.f32 %v539_v25  ;;  %v1336_v50 = vpop.eup %1335  ;;  %v514_v51 = vadd.f32 1.0, %v1334_v48  ;;  %v561_v25 = vld [vmem:[%s1867_s2 + $0x18] sm:$0xff] }
 0x154   :  { %1355 = vtanh.f32 %v540_v29  ;;  %v1338_v52 = vpop.eup %1337  ;;  %v565_v29 = vld [vmem:[%s1867_s2 + $0x38] sm:$0xff]  ;;  %s1493_s2 = smov [#allocation2]  }
 0x155   :  { %1357 = vrcp.f32 %v513_v49  ;;  %v515_v54 = vadd.f32 1.0, %v1338_v52  ;;  %s1014_s12 = sshll.u32 %s1493_s2, 4  ;;  %s1015_s12 = int_to_ptr.vmem [resolvable:$true] %s1014_s12 }
 0x156   :  { %v1340_v53 = vpop.eup %1339  ;;  %1359 = vrcp.f32 %v514_v51  ;;  %s1465_s13 = scalar_lea.vmem %s1015_s12, 32  ;;  %p1470_p1 = scmp.lt.s32.totalorder %s1015_s12, %s1015_s12 }
 0x157   :  { %v1342_v55 = vpop.eup %1341  ;;  %1361 = vtanh.f32 %v541_v34  ;;  %v516_v56 = vadd.f32 1.0, %v1340_v53  ;;  %v573_v34 = vpop.permute.xlu0 %572  ;;  %p1466_p0 = scmp.ne.s32.totalorder %s1015_s12, %s1465_s13  ;;  %p1471_p2 = scmp.lt.s32.totalorder %s1465_s13, %s1465_s13 }
 0x158   :  { %v1344_v57 = vpop.eup %1343  ;;  %1363 = vrcp.f32 %v515_v54  ;;  %v517_v58 = vadd.f32 1.0, %v1342_v55  ;;  %v1845_v53 = vpop.permute.xlu1 %617 }
 0x159   :  { %v1346_v59 = vpop.eup %1345  ;;  %1365 = vrcp.f32 %v516_v56  ;;  %v550_v60 = vmul.f32 %v1344_v57, %v1328_v44  ;;  %p1472_p3 = por %p1471_p2, %p1470_p1 }
 0x15a   :  { %v1348_v61 = vpop.eup %1347  ;;  %1367 = vrcp.f32 %v517_v58  ;;  %v551_v62 = vmul.f32 %v1346_v59, %v1330_v46 }
 0x15b   :  { %v1350_v1 = vpop.eup %1349  ;;  %v578_v40 = vpop.permute.xlu0 %577  ;;  %p1473_p4 = pnand %p1472_p3, %p1466_p0 }
 0x15c   :  { %v1352_v3 = vpop.eup %1351 }
 0x15d   :  { %v1354_v4 = vpop.eup %1353  ;;  %v552_v5 = vmul.f32 %v1352_v3, %v1336_v50 }
 0x15e   :  { %v1356_v6 = vpop.eup %1355 }
 0x15f   :  { %v1358_v7 = vpop.eup %1357  ;;  %v1260_v8 = vpack.c.bf16 %v552_v5, %v550_v60  ;;  %v1843_v50 = vpop.permute.xlu0 %612 }
 0x160   :  { %v1360_v9 = vpop.eup %1359  ;;  %v553_v10 = vmul.f32 %v1358_v7, %v1348_v61  ;;  %v598_v5 = vpop.permute.xlu1 %597 }
 0x161   :  { %v1362_v11 = vpop.eup %1361  ;;  %v554_v12 = vmul.f32 %v1360_v9, %v1350_v1 }
 0x162   :  { %v1364_v13 = vpop.eup %1363  ;;  %v1258_v14 = vpack.c.bf16 %v553_v10, %v551_v62 }
 0x163   :  { %v1366_v15 = vpop.eup %1365  ;;  %v555_v16 = vmul.f32 %v1364_v13, %v1354_v4  ;;  %v593_v62 = vpop.permute.xlu0 %592 }
 0x164   :  { %v1368_v17 = vpop.eup %1367  ;;  %1259 = vmatprep.subr.bf16.mxu1 %v1258_v14  ;;  %v556_v18 = vmul.f32 %v1366_v15, %v1356_v6 }
 0x165   :  { %1261 = vmatpush1.bf16.msra.mxu1 %v1260_v8  ;;  %v557_v19 = vmul.f32 %v1368_v17, %v1362_v11 }
 0x166   :  { %v1264_v20 = vpack.c.bf16 %v556_v18, %v554_v12 }
 0x167   :  { %v1262_v21 = vpack.c.bf16 %v557_v19, %v555_v16  ;;  %v603_v19 = vpop.permute.xlu1 %602 }
 0x169   :  { %1263 = vmatprep.subr.bf16.mxu1 %v1262_v21 }
 0x16a   :  { %1265 = vmatpush1.bf16.msra.mxu1 %v1264_v20 }
 0x16d   :  { %1166 = vmatmul.mubr.msk.f32.vlgmr.msra.gmra.mrb[0].mxu1 %vm630_vm0, %v558_v22 }
 0x16e   :  { %737 = vmatprep.mubr.f32.mxu1 %v1490_v63 }
 0x171   :  { %1167 = vmatmul.mubr.msk.f32.gmra.mrb[2].mxu1 %vm630_vm0, %v559_v23 }
 0x172   :  { %743 = vmatprep.mubr.f32.mxu1 %v1490_v63 }
 0x175   :  { %1168 = vmatmul.mubr.msk.f32.gmra.mrb[4].mxu1 %vm630_vm0, %v560_v24 }
 0x176   :  { %749 = vmatprep.mubr.f32.mxu1 %v1490_v63 }
 0x179   :  { %1169 = vmatmul.mubr.msk.f32.gmra.mrb[6].mxu1 %vm630_vm0, %v561_v25 }
 0x17a   :  { %755 = vmatprep.mubr.f32.mxu1 %v1490_v63 }
 0x17d   :  { %1170 = vmatmul.mubr.msk.f32.gmra.mrb[8].mxu1 %vm630_vm0, %v562_v26 }
 0x17e   :  { %761 = vmatprep.mubr.f32.mxu1 %v1490_v63 }
 0x181   :  { %1171 = vmatmul.mubr.msk.f32.gmra.mrb[10].mxu1 %vm630_vm0, %v563_v27 }
 0x182   :  { %767 = vmatprep.mubr.f32.mxu1 %v1490_v63 }
 0x185   :  { %1172 = vmatmul.mubr.msk.f32.gmra.mrb[12].mxu1 %vm630_vm0, %v564_v28 }
 0x186   :  { %773 = vmatprep.mubr.f32.mxu1 %v1490_v63 }
 0x189   :  { %1173 = vmatmul.mubr.msk.f32.gmra.mrb[14].mxu1 %vm630_vm0, %v565_v29 }
 0x18a   :  { %779 = vmatprep.mubr.f32.mxu1 %v1490_v63 }
 0x18d   :  { %1174 = vmatmul.mubr.msk.f32.gmra.mrb[16].mxu1 %vm630_vm0, %v566_v30 }
 0x18e   :  { %785 = vmatprep.mubr.f32.mxu1 %v1490_v63 }
 0x191   :  { %1175 = vmatmul.mubr.msk.f32.gmra.mrb[18].mxu1 %vm630_vm0, %v567_v31 }
 0x192   :  { %791 = vmatprep.mubr.f32.mxu1 %v1490_v63 }
 0x195   :  { %1176 = vmatmul.mubr.msk.f32.gmra.mrb[20].mxu1 %vm630_vm0, %v568_v32  ;;  %v608_v32 = vpop.permute.xlu1 %607 }
 0x196   :  { %797 = vmatprep.mubr.f32.mxu1 %v1490_v63 }
 0x199   :  { %1177 = vmatmul.mubr.msk.f32.gmra.mrb[22].mxu1 %vm630_vm0, %v569_v33 }
 0x240   :  { %v733_v36 = vpop.f32.mrb[0].mxu1 }
 0x241   :  { %v734_v37 = vadd.f32 %v733_v36, %v573_v34  ;;  %v735_v38 = vpop.f32.mrb[1].mxu1 }
 0x242   :  { %v736_v39 = vadd.f32 %v735_v38, %v573_v34 }
 0x243   :  { %v1178_v41 = vmul.f32 -1.442695, %v734_v37 }
 0x244   :  { %v1179_v42 = vmul.f32 -1.442695, %v736_v39  ;;  %v739_v44 = vpop.f32.mrb[2].mxu1 }
 0x245   :  { %1369 = vpow2.f32 %v1178_v41  ;;  %v740_v45 = vadd.f32 %v739_v44, %v578_v40  ;;  %v741_v63 = vpop.f32.mrb[3].mxu1 }
 0x246   :  { %1371 = vpow2.f32 %v1179_v42  ;;  %v742_v46 = vadd.f32 %v741_v63, %v578_v40 }
 0x247   :  { %v1180_v47 = vmul.f32 -1.442695, %v740_v45 }
 0x248   :  { %v1181_v48 = vmul.f32 -1.442695, %v742_v46  ;;  %v745_v49 = vpop.f32.mrb[4].mxu1 }
 0x249   :  { %1373 = vpow2.f32 %v1180_v47  ;;  %v746_v51 = vadd.f32 %v745_v49, %v583_v35  ;;  %v747_v52 = vpop.f32.mrb[5].mxu1 }
 0x24a   :  { %1375 = vpow2.f32 %v1181_v48  ;;  %v748_v54 = vadd.f32 %v747_v52, %v583_v35 }
 0x24b   :  { %v1182_v55 = vmul.f32 -1.442695, %v746_v51 }
 0x24c   :  { %v1183_v56 = vmul.f32 -1.442695, %v748_v54  ;;  %v751_v57 = vpop.f32.mrb[6].mxu1 }
 0x24d   :  { %1377 = vpow2.f32 %v1182_v55  ;;  %v752_v58 = vadd.f32 %v751_v57, %v588_v43  ;;  %v753_v59 = vpop.f32.mrb[7].mxu1 }
 0x24e   :  { %1379 = vpow2.f32 %v1183_v56  ;;  %v754_v60 = vadd.f32 %v753_v59, %v588_v43 }
 0x24f   :  { %v1370_v61 = vpop.eup %1369  ;;  %v1184_v1 = vmul.f32 -1.442695, %v752_v58 }
 0x250   :  { %v1372_v3 = vpop.eup %1371  ;;  %v828_v4 = vadd.f32 1.0, %v1370_v61  ;;  %v1185_v6 = vmul.f32 -1.442695, %v754_v60  ;;  %v757_v7 = vpop.f32.mrb[8].mxu1 }
 0x251   :  { %v829_v8 = vadd.f32 1.0, %v1372_v3  ;;  %1381 = vpow2.f32 %v1184_v1  ;;  %v758_v9 = vadd.f32 %v757_v7, %v593_v62  ;;  %v759_v10 = vpop.f32.mrb[9].mxu1  ;;  %v623_v61 = vpop.permute.xlu0 %622 }
 0x252   :  { %1383 = vrcp.f32 %v828_v4  ;;  %v760_v14 = vadd.f32 %v759_v10, %v593_v62 }
 0x253   :  { %v1374_v11 = vpop.eup %1373  ;;  %1385 = vrcp.f32 %v829_v8 }
 0x254   :  { %v1376_v12 = vpop.eup %1375  ;;  %v830_v13 = vadd.f32 1.0, %v1374_v11  ;;  %1387 = vpow2.f32 %v1185_v6  ;;  %v763_v15 = vpop.f32.mrb[10].mxu1 }
 0x255   :  { %v831_v16 = vadd.f32 1.0, %v1376_v12  ;;  %1389 = vtanh.f32 %v758_v9  ;;  %v764_v17 = vadd.f32 %v763_v15, %v598_v5  ;;  %v765_v18 = vpop.f32.mrb[11].mxu1 }
 0x256   :  { %1391 = vrcp.f32 %v830_v13  ;;  %v766_v23 = vadd.f32 %v765_v18, %v598_v5 }
 0x257   :  { %v1378_v20 = vpop.eup %1377  ;;  %1393 = vrcp.f32 %v831_v16 }
 0x258   :  { %v1380_v21 = vpop.eup %1379  ;;  %v832_v22 = vadd.f32 1.0, %v1378_v20  ;;  %1395 = vtanh.f32 %v760_v14  ;;  %v769_v24 = vpop.f32.mrb[12].mxu1 }
 0x259   :  { %v833_v25 = vadd.f32 1.0, %v1380_v21  ;;  %1397 = vtanh.f32 %v764_v17  ;;  %v770_v26 = vadd.f32 %v769_v24, %v603_v19  ;;  %v771_v27 = vpop.f32.mrb[13].mxu1 }
 0x25a   :  { %1399 = vrcp.f32 %v832_v22  ;;  %v772_v29 = vadd.f32 %v771_v27, %v603_v19 }
 0x25b   :  { %v1382_v28 = vpop.eup %1381  ;;  %1401 = vrcp.f32 %v833_v25 }
 0x25c   :  { %v1384_v30 = vpop.eup %1383  ;;  %v834_v31 = vadd.f32 1.0, %v1382_v28  ;;  %1403 = vtanh.f32 %v766_v23  ;;  %v775_v33 = vpop.f32.mrb[14].mxu1 }
 0x25d   :  { %v1386_v34 = vpop.eup %1385  ;;  %1405 = vtanh.f32 %v770_v26  ;;  %v776_v35 = vadd.f32 %v775_v33, %v608_v32  ;;  %v777_v36 = vpop.f32.mrb[15].mxu1 }
 0x25e   :  { %v1388_v37 = vpop.eup %1387  ;;  %1407 = vrcp.f32 %v834_v31  ;;  %v778_v40 = vadd.f32 %v777_v36, %v608_v32 }
 0x25f   :  { %v1390_v38 = vpop.eup %1389  ;;  %v835_v39 = vadd.f32 1.0, %v1388_v37  ;;  %1409 = vtanh.f32 %v772_v29 }
 0x260   :  { %v1392_v41 = vpop.eup %1391  ;;  %v908_v42 = vmul.f32 %v1390_v38, %v1384_v30  ;;  %1411 = vtanh.f32 %v776_v35  ;;  %v781_v43 = vpop.f32.mrb[16].mxu1 }
 0x261   :  { %v1394_v44 = vpop.eup %1393  ;;  %1413 = vrcp.f32 %v835_v39  ;;  %v782_v45 = vadd.f32 %v781_v43, %v1843_v50  ;;  %v783_v63 = vpop.f32.mrb[17].mxu1 }
 0x262   :  { %v1396_v46 = vpop.eup %1395  ;;  %v784_v47 = vadd.f32 %v783_v63, %v1843_v50  ;;  %1415 = vtanh.f32 %v778_v40 }
 0x263   :  { %v1398_v48 = vpop.eup %1397  ;;  %v909_v49 = vmul.f32 %v1396_v46, %v1386_v34  ;;  %v1186_v51 = vmul.f32 -1.442695, %v782_v45 }
 0x264   :  { %v1400_v52 = vpop.eup %1399  ;;  %v910_v54 = vmul.f32 %v1398_v48, %v1392_v41  ;;  %v1187_v55 = vmul.f32 -1.442695, %v784_v47  ;;  %v787_v56 = vpop.f32.mrb[18].mxu1 }
 0x265   :  { %v1402_v57 = vpop.eup %1401  ;;  %v788_v58 = vadd.f32 %v787_v56, %v1845_v53  ;;  %v789_v59 = vpop.f32.mrb[19].mxu1  ;;  %1417 = vpow2.f32 %v1186_v51 }
 0x266   :  { %v1404_v60 = vpop.eup %1403  ;;  %v790_v62 = vadd.f32 %v789_v59, %v1845_v53  ;;  %1419 = vpow2.f32 %v1187_v55  ;;  %v628_v53 = vpop.permute.xlu0 %627 }
 0x267   :  { %v1406_v1 = vpop.eup %1405  ;;  %v911_v3 = vmul.f32 %v1404_v60, %v1394_v44  ;;  %v1188_v50 = vmul.f32 -1.442695, %v788_v58 }
 0x268   :  { %v1408_v4 = vpop.eup %1407  ;;  %v912_v5 = vmul.f32 %v1406_v1, %v1400_v52  ;;  %v793_v6 = vpop.f32.mrb[20].mxu1  ;;  %v1189_v12 = vmul.f32 -1.442695, %v790_v62 }
 0x269   :  { %v1410_v7 = vpop.eup %1409  ;;  %v794_v8 = vadd.f32 %v793_v6, %v623_v61  ;;  %v795_v9 = vpop.f32.mrb[21].mxu1  ;;  %1421 = vpow2.f32 %v1188_v50 }
 0x26a   :  { %v1412_v10 = vpop.eup %1411  ;;  %v913_v11 = vmul.f32 %v1410_v7, %v1402_v57  ;;  %v796_v13 = vadd.f32 %v795_v9, %v623_v61  ;;  %1423 = vtanh.f32 %v908_v42  ;;  %v935_v52 = vpop.permute.xlu0 %934 }
 0x26b   :  { %v1414_v14 = vpop.eup %1413  ;;  %v914_v15 = vmul.f32 %v1412_v10, %v1408_v4  ;;  %v1190_v16 = vmul.f32 -1.442695, %v794_v8  ;;  %1425 = vtanh.f32 %v909_v49  ;;  %v940_v57 = vpop.permute.xlu1 %939 }
 0x26c   :  { %v799_v17 = vpop.f32.mrb[22].mxu1  ;;  %v1416_v18 = vpop.eup %1415  ;;  %v1191_v19 = vmul.f32 -1.442695, %v796_v13  ;;  %1427 = vpow2.f32 %v1189_v12 }
 0x26d   :  { %v800_v20 = vadd.f32 %v799_v17, %v628_v53  ;;  %v801_v21 = vpop.f32.mrb[23].mxu1  ;;  %v915_v22 = vmul.f32 %v1416_v18, %v1414_v14  ;;  %1429 = vpow2.f32 %v1190_v16 }
 0x26e   :  { %v802_v23 = vadd.f32 %v801_v21, %v628_v53  ;;  %1431 = vtanh.f32 %v910_v54 }
 0x26f   :  { %v1192_v24 = vmul.f32 -1.442695, %v800_v20  ;;  %v1418_v26 = vpop.eup %1417  ;;  %1433 = vpow2.f32 %v1191_v19  ;;  %v950_v14 = vpop.permute.xlu1 %949 }
 0x270   :  { %v1193_v25 = vmul.f32 -1.442695, %v802_v23  ;;  %v1420_v27 = vpop.eup %1419  ;;  %v884_v28 = vadd.f32 1.0, %v1418_v26 }
 0x271   :  { %1435 = vpow2.f32 %v1192_v24  ;;  %v885_v29 = vadd.f32 1.0, %v1420_v27 }
 0x272   :  { %1437 = vpow2.f32 %v1193_v25 }
 0x273   :  { %1439 = vrcp.f32 %v884_v28  ;;  %v1422_v30 = vpop.eup %1421  ;;  %v1492_v28 = vmov 1966171168  }
 0x274   :  { %1441 = vrcp.f32 %v885_v29  ;;  %v1424_v31 = vpop.eup %1423  ;;  %v886_v32 = vadd.f32 1.0, %v1422_v30  ;;  %v989_v29 = vunpack.c.l.s4 %v1492_v28 }
 0x275   :  { %1443 = vtanh.f32 %v911_v3  ;;  %v1426_v33 = vpop.eup %1425 }
 0x276   :  { %1445 = vtanh.f32 %v912_v5  ;;  %v1428_v34 = vpop.eup %1427  ;;  %v945_v5 = vpop.permute.xlu0 %944 }
 0x277   :  { %1447 = vrcp.f32 %v886_v32  ;;  %v1430_v35 = vpop.eup %1429  ;;  %v887_v36 = vadd.f32 1.0, %v1428_v34  ;;  %v990_v34 = vunpack.c.0.s8 %v989_v29 }
 0x278   :  { %1449 = vtanh.f32 %v913_v11  ;;  %v1432_v37 = vpop.eup %1431  ;;  %v888_v38 = vadd.f32 1.0, %v1430_v35 }
 0x279   :  { %1451 = vtanh.f32 %v914_v15  ;;  %v1434_v39 = vpop.eup %1433 }
 0x27a   :  { %1453 = vrcp.f32 %v887_v36  ;;  %v889_v41 = vadd.f32 1.0, %v1434_v39  ;;  %v981_v36 = vpop.permute.xlu0 %980 }
 0x27b   :  { %v1436_v40 = vpop.eup %1435  ;;  %1455 = vrcp.f32 %v888_v38 }
 0x27c   :  { %v1438_v42 = vpop.eup %1437  ;;  %1457 = vtanh.f32 %v915_v22  ;;  %v890_v43 = vadd.f32 1.0, %v1436_v40  ;;  %v993_v40 = vsub.s32 %v990_v34, %v1523_v2 }
 0x27d   :  { %v1440_v44 = vpop.eup %1439  ;;  %1459 = vrcp.f32 %v889_v41  ;;  %v891_v45 = vadd.f32 1.0, %v1438_v42 }
 0x27e   :  { %v1442_v63 = vpop.eup %1441  ;;  %v924_v46 = vmul.f32 %v1440_v44, %v1424_v31  ;;  %1461 = vrcp.f32 %v890_v43 }
 0x27f   :  { %v1444_v47 = vpop.eup %1443  ;;  %v925_v48 = vmul.f32 %v1442_v63, %v1426_v33  ;;  %1463 = vrcp.f32 %v891_v45 }
 0x280   :  { %v1446_v49 = vpop.eup %1445  ;;  %v952_v59 = vmul.f32 %v935_v52, %v924_v46 }
 0x281   :  { %v1448_v51 = vpop.eup %1447  ;;  %v953_v6 = vmul.f32 %v935_v52, %v925_v48 }
 0x282   :  { %v1450_v54 = vpop.eup %1449  ;;  %v926_v55 = vmul.f32 %v1448_v51, %v1432_v37 }
 0x283   :  { %v1452_v56 = vpop.eup %1451 }
 0x284   :  { %v1454_v58 = vpop.eup %1453  ;;  %v954_v60 = vmul.f32 %v940_v57, %v926_v55 }
 0x285   :  { %v1456_v61 = vpop.eup %1455  ;;  %v927_v62 = vmul.f32 %v1454_v58, %v1444_v47 }
 0x286   :  { %v1458_v1 = vpop.eup %1457  ;;  %v960_v3 = vadd.f32 %v954_v60, %v952_v59  ;;  %v928_v50 = vmul.f32 %v1456_v61, %v1446_v49 }
 0x287   :  { %v1460_v4 = vpop.eup %1459  ;;  %v955_v7 = vmul.f32 %v940_v57, %v927_v62 }
 0x288   :  { %v1462_v8 = vpop.eup %1461  ;;  %v956_v9 = vmul.f32 %v945_v5, %v928_v50  ;;  %v929_v10 = vmul.f32 %v1460_v4, %v1450_v54 }
 0x289   :  { %v1464_v11 = vpop.eup %1463  ;;  %v969_v12 = vadd.f32 %v955_v7, %v953_v6  ;;  %v930_v13 = vmul.f32 %v1462_v8, %v1452_v56 }
 0x28a   :  { %v957_v15 = vmul.f32 %v945_v5, %v929_v10  ;;  %v931_v16 = vmul.f32 %v1464_v11, %v1458_v1  ;;  %v961_v53 = vadd.f32 %v960_v3, %v956_v9 }
 0x28b   :  { %v958_v17 = vmul.f32 %v950_v14, %v930_v13 }
 0x28c   :  { %v959_v18 = vmul.f32 %v950_v14, %v931_v16  ;;  %v970_v19 = vadd.f32 %v969_v12, %v957_v15 }
 0x28d   :  { %v962_v20 = vadd.f32 %v961_v53, %v958_v17 }
 0x28e   :  { %v971_v21 = vadd.f32 %v970_v19, %v959_v18 }
 0x28f   :  { %v963_v22 = vrot.slane %v962_v20, 4 }
 0x290   :  { %v972_v23 = vrot.slane %v971_v21, 4 }
 0x291   :  { %v964_v24 = vadd.f32 %v963_v22, %v962_v20 }
 0x292   :  { %v973_v25 = vadd.f32 %v972_v23, %v971_v21 }
 0x293   :  { %v965_v26 = vrot.slane %v964_v24, 2 }
 0x294   :  { %v974_v27 = vrot.slane %v973_v25, 2 }
 0x295   :  { %v966_v30 = vadd.f32 %v965_v26, %v964_v24 }
 0x296   :  { %v975_v31 = vadd.f32 %v974_v27, %v973_v25 }
 0x297   :  { %v967_v32 = vrot.slane %v966_v30, 1 }
 0x298   :  { %v976_v33 = vrot.slane %v975_v31, 1 }
 0x299   :  { %v968_v35 = vadd.f32 %v967_v32, %v966_v30 }
 0x29a   :  { %v977_v37 = vadd.f32 %v976_v33, %v975_v31 }
 0x29b   :  { %v983_v38 = vadd.f32 %v981_v36, %v968_v35 }
 0x29c   :  { %v984_v39 = vadd.f32 %v981_v36, %v977_v37 }
 0x29e   :  { %v987_v41 = vcombine.low %v983_v38, %v984_v39 }
 0x2a0   :  { %v994_v42 = vrot.slane %v987_v41, %v993_v40 }
 0x2a2   :  { %v1001_v43 = vrot.slane %v994_v42, %v993_v40 }
 0x2a4   :  { %1007 = vst.msk [vmem:[#allocation2] sm:$0x3] %vm1005_vm1, %v1001_v43 }
 0x2a5   :  { %1476 = shalt.err (!%p1473_p4)
}
 0x2a6   :  { %s1477_s1 = scalar_lea.hbm %s1869_s4, 32 }
 0x2a7   :  { %p1478_p5 = scmp.ne.s32.totalorder %s1869_s4, %s1477_s1  ;;  %p1481_p6 = scmp.lt.u32.totalorder %s1477_s1, %s1869_s4 }
 0x2a9   :  { %p1483_p7 = pnand %p1481_p6, %p1478_p5 }
 0x2ab   :  { %1486 = shalt.err (!%p1483_p7)
}
 0x2ac   :  { %1017 = dma.vmem_to_hbm [thread:$0]  %s1015_s12, 32, %s1869_s4, [#allocation3]  }
 0x2ad   :  { %1487 = dma.done.wait [#allocation3], 32  }
 0x2ae   :  { %1488 = vsyncadd [#allocation3], 4294967264 }
 0x2af   :  { %1021 = vsyncpa [#allocation3], 1 }

</bundles_post_ra>
